<compile_context>
chip_gen: v7x
topology: tpu7x:2x2x1
jax: 0.10.0
libtpu: 0.0.40
codegen_flags: <defaults>
</compile_context>

<pallas_src>
import jax
import jax.numpy as jnp
from jax.experimental import pallas as pl
from jax.experimental.pallas import tpu as pltpu


def _decoder_head_kernel(x_ref, g_ref, s_ref, o_ref):
    """One (batch, row-tile, col-tile) step of fused 1x1-conv + PixelShuffle(2).

    x_ref: (Cin, rows, wt)             input tile; rows on sublanes, cols on lanes
    g_ref: (Cin*wt, (Cout//2)*2*wt)    fused conv + column-interleave matrix
    s_ref: (2, 2*rows, rows)           one-hot row scatters (even / odd output rows)
    o_ref: (Co, 2*rows, 2*wt)          final pixel-shuffled NCHW output tile
    """
    cin, rows, wt = x_ref.shape
    co_n = o_ref.shape[0]
    two_wt = 2 * wt

    # c_all[r, (2*co + i)*2*wt + 2*w + j] = conv_out[4*co + 2*i + j, r, w]
    # (conv contraction over Cin and the column interleave in one MXU pass;
    #  MXU has full slack in this HBM-bound kernel)
    c_all = jnp.dot(x_ref[0], g_ref[0:wt, :],
                    preferred_element_type=jnp.float32)
    for ci in range(1, cin):
        c_all += jnp.dot(x_ref[ci], g_ref[ci * wt:(ci + 1) * wt, :],
                         preferred_element_type=jnp.float32)

    s_even = s_ref[0]   # (2*rows, rows): one-hot, output row 2r   <- tile row r
    s_odd = s_ref[1]    # (2*rows, rows): one-hot, output row 2r+1 <- tile row r
    for co in range(co_n):
        c_even = c_all[:, (2 * co) * two_wt:(2 * co + 1) * two_wt]      # i = 0
        c_odd = c_all[:, (2 * co + 1) * two_wt:(2 * co + 2) * two_wt]   # i = 1
        o_ref[co] = (
            jnp.dot(s_even, c_even, preferred_element_type=jnp.float32)
            + jnp.dot(s_odd, c_odd, preferred_element_type=jnp.float32)
        ).astype(o_ref.dtype)


def _pick_tiles(n: int, h: int, w: int):
    """Choose (row_tile, col_tile).

    Mosaic (8,128) legality on the blocks:
      x block minor dims (rows, wt): rows % 8 == 0 or rows == H,
                                     wt % 128 == 0 or wt == W.
      out block minor dims (2*rows, 2*wt) follow from the above.
    """
    # Column tile: full width if it fits, else 128 (lane-dense, legal, and it
    # caps the O(wt)/pixel MXU cost of the fused column-interleave matmul).
    wt = w if w <= 128 else 128

    # Row tile: target ~32K pixels per step to amortize per-step overhead.
    target_px = 32768
    if h <= 8:
        rows = h
    else:
        rows = max(8, min(h, (target_px // max(wt, 1)) // 8 * 8))
        if rows < h:
            rows = (rows // 8) * 8

    # v7x megacore: keep >= 4 grid steps so both TensorCores get work
    # (no effect on single-core v5e / v6e).
    def n_steps(r):
        return n * pl.cdiv(h, r) * pl.cdiv(w, wt)

    while (n_steps(rows) < 4 and rows > 8 and rows % 2 == 0
           and (rows // 2) % 8 == 0):
        rows //= 2
    return rows, wt


def decoder_head(x: jax.Array, weight: jax.Array) -> jax.Array:
    """Forward pass of _DecoderHead.

    Args:
      x:      (N, planes, H, W) float32, NCHW (PyTorch convention).
      weight: (2*planes, planes) or (2*planes, planes, 1, 1) Conv2d weight.

    Returns:
      (N, planes // 2, 2*H, 2*W) float32, NCHW.
    """
    N, Cin, H, W = x.shape
    if weight.ndim == 4:
        weight = weight.reshape(weight.shape[0], weight.shape[1])
    Cout = weight.shape[0]
    assert Cout == 2 * Cin, "Conv2d must map planes -> 2*planes"
    assert Cout % 4 == 0, "PixelShuffle(2) needs 2*planes divisible by 4"
    Co = Cout // 4
    U = Cout // 2

    rows, wt = _pick_tiles(N, H, W)
    n_r = pl.cdiv(H, rows)
    n_c = pl.cdiv(W, wt)

    # Fused conv + column-interleave matrix:
    #   G[ci*wt + w, (2*co+i)*2*wt + 2*w' + j] = weight[4*co+2*i+j, ci] * d(w,w')
    q = jnp.arange(2 * wt)
    wi = jnp.arange(wt)
    ji = jnp.arange(2)
    # E[j, w, q] = 1  iff  q == 2*w + j
    E = (q[None, None, :] ==
         (2 * wi[None, :, None] + ji[:, None, None])).astype(x.dtype)
    w2 = weight.astype(x.dtype).reshape(U, 2, Cin)   # w2[u, j, ci] = weight[2u+j, ci]
    G = jnp.einsum("ujc,jwq->cwuq", w2, E).reshape(Cin * wt, U * 2 * wt)

    # One-hot row-interleave scatter matrices (even rows / odd rows).
    a = jnp.arange(2 * rows)
    r_ = jnp.arange(rows)
    S = jnp.stack(
        [(a[:, None] == 2 * r_[None, :]).astype(x.dtype),
         (a[:, None] == 2 * r_[None, :] + 1).astype(x.dtype)],
        axis=0)                                       # (2, 2*rows, rows)

    cost = pl.CostEstimate(
        flops=2 * N * H * W * Cin * Cout,
        transcendentals=0,
        bytes_accessed=(Cin + Cout) * N * H * W * x.dtype.itemsize,
    )

    return pl.pallas_call(
        _decoder_head_kernel,
        out_shape=jax.ShapeDtypeStruct((N, Co, 2 * H, 2 * W), x.dtype),
        grid=(N, n_r, n_c),
        in_specs=[
            pl.BlockSpec((None, Cin, rows, wt),
                         lambda n, tr, tc: (n, 0, tr, tc)),
            pl.BlockSpec((Cin * wt, U * 2 * wt),
                         lambda n, tr, tc: (0, 0)),
            pl.BlockSpec((2, 2 * rows, rows),
                         lambda n, tr, tc: (0, 0, 0)),
        ],
        out_specs=pl.BlockSpec((None, Co, 2 * rows, 2 * wt),
                               lambda n, tr, tc: (n, 0, tr, tc)),
        compiler_params=pltpu.CompilerParams(
            dimension_semantics=("parallel", "parallel", "parallel"),
            vmem_limit_bytes=32 * 1024 * 1024,
        ),
        cost_estimate=cost,
    )(x, G, S)


def _reference(x, weight):
    # Pure-JAX reference: 1x1 conv as einsum + pixel shuffle.
    N, Cin, H, W = x.shape
    Cout = weight.shape[0]
    y = jnp.einsum("nchw,oc->nohw", x, weight)
    r = 2
    Co = Cout // (r * r)
    y = y.reshape(N, Co, r, r, H, W).transpose(0, 1, 4, 2, 5, 3)
    return y.reshape(N, Co, H * r, W * r)


if __name__ == "__main__":
    key = jax.random.PRNGKey(0)
    k_x, k_w = jax.random.split(key)

    # Small shapes consistent with the module: batch=2, planes=4, spatial=16
    N, planes, H, W = 2, 4, 16, 16
    Cout = 2 * planes

    x = jax.random.normal(k_x, (N, planes, H, W), dtype=jnp.float32)
    # Deterministic Conv2d weight init (uniform in +/- 1/sqrt(fan_in)),
    # shape (Cout, Cin) for the 1x1 kernel.
    bound = 1.0 / (planes ** 0.5)
    weight = jax.random.uniform(
        k_w, (Cout, planes), dtype=jnp.float32, minval=-bound, maxval=bound
    )

    out = decoder_head(x, weight)
    out = jax.block_until_ready(out)

    ref = _reference(x, weight)
    assert out.shape == (N, planes // 2, 2 * H, 2 * W), out.shape
    assert jnp.allclose(out, ref, atol=1e-5, rtol=1e-5), \
        float(jnp.max(jnp.abs(out - ref)))

    print("KERNEL_OK")
</pallas_src>

<mosaic_0001>
module attributes {stable_mosaic.version = 11 : i64} {
  func.func @_decoder_head_kernel(%arg0: i32, %arg1: i32, %arg2: i32, %arg3: memref<1x4x8x16xf32, #tpu.memory_space<vmem>>, %arg4: memref<64x128xf32, #tpu.memory_space<vmem>>, %arg5: memref<2x16x8xf32, #tpu.memory_space<vmem>>, %arg6: memref<1x2x16x32xf32, #tpu.memory_space<vmem>>) attributes {dimension_semantics = [#tpu.dimension_semantics<parallel>, #tpu.dimension_semantics<parallel>, #tpu.dimension_semantics<parallel>], iteration_bounds = array<i64: 2, 2, 1>, scalar_prefetch = 0 : i64, scratch_operands = 0 : i64, tpu.core_type = #tpu.core_type<tc>, window_params = [{transform_indices = @transform_0, window_bounds = array<i64: 1, 4, 8, 16>}, {pipeline_mode = #tpu.pipeline_mode<synchronous>, transform_indices = @transform_1, window_bounds = array<i64: 64, 128>}, {pipeline_mode = #tpu.pipeline_mode<synchronous>, transform_indices = @transform_2, window_bounds = array<i64: 2, 16, 8>}, {transform_indices = @transform_3, window_bounds = array<i64: 1, 2, 16, 32>}]} {
    %c0 = arith.constant 0 : index
    %c0_0 = arith.constant 0 : index
    %c0_1 = arith.constant 0 : index
    %c0_2 = arith.constant 0 : index
    %0 = vector.load %arg3[%c0, %c0_0, %c0_1, %c0_2] : memref<1x4x8x16xf32, #tpu.memory_space<vmem>>, vector<1x1x8x16xf32>
    %1 = vector.shape_cast %0 : vector<1x1x8x16xf32> to vector<8x16xf32>
    %c0_3 = arith.constant 0 : index
    %c0_4 = arith.constant 0 : index
    %2 = vector.load %arg4[%c0_3, %c0_4] : memref<64x128xf32, #tpu.memory_space<vmem>>, vector<16x128xf32>
    %cst = arith.constant dense<0.000000e+00> : vector<8x128xf32>
    %3 = tpu.matmul %1, %2, %cst {dimension_numbers = #tpu.dot_dimension_numbers<[1], [0], [0], [1], [0, 0, 1, 1], [], []>} : vector<8x16xf32>, vector<16x128xf32>, vector<8x128xf32> -> vector<8x128xf32>
    %c0_5 = arith.constant 0 : index
    %c1 = arith.constant 1 : index
    %c0_6 = arith.constant 0 : index
    %c0_7 = arith.constant 0 : index
    %4 = vector.load %arg3[%c0_5, %c1, %c0_6, %c0_7] : memref<1x4x8x16xf32, #tpu.memory_space<vmem>>, vector<1x1x8x16xf32>
    %5 = vector.shape_cast %4 : vector<1x1x8x16xf32> to vector<8x16xf32>
    %c16 = arith.constant 16 : index
    %c0_8 = arith.constant 0 : index
    %6 = vector.load %arg4[%c16, %c0_8] : memref<64x128xf32, #tpu.memory_space<vmem>>, vector<16x128xf32>
    %cst_9 = arith.constant dense<0.000000e+00> : vector<8x128xf32>
    %7 = tpu.matmul %5, %6, %cst_9 {dimension_numbers = #tpu.dot_dimension_numbers<[1], [0], [0], [1], [0, 0, 1, 1], [], []>} : vector<8x16xf32>, vector<16x128xf32>, vector<8x128xf32> -> vector<8x128xf32>
    %8 = arith.addf %3, %7 : vector<8x128xf32>
    %c0_10 = arith.constant 0 : index
    %c2 = arith.constant 2 : index
    %c0_11 = arith.constant 0 : index
    %c0_12 = arith.constant 0 : index
    %9 = vector.load %arg3[%c0_10, %c2, %c0_11, %c0_12] : memref<1x4x8x16xf32, #tpu.memory_space<vmem>>, vector<1x1x8x16xf32>
    %10 = vector.shape_cast %9 : vector<1x1x8x16xf32> to vector<8x16xf32>
    %c32 = arith.constant 32 : index
    %c0_13 = arith.constant 0 : index
    %11 = vector.load %arg4[%c32, %c0_13] : memref<64x128xf32, #tpu.memory_space<vmem>>, vector<16x128xf32>
    %cst_14 = arith.constant dense<0.000000e+00> : vector<8x128xf32>
    %12 = tpu.matmul %10, %11, %cst_14 {dimension_numbers = #tpu.dot_dimension_numbers<[1], [0], [0], [1], [0, 0, 1, 1], [], []>} : vector<8x16xf32>, vector<16x128xf32>, vector<8x128xf32> -> vector<8x128xf32>
    %13 = arith.addf %8, %12 : vector<8x128xf32>
    %c0_15 = arith.constant 0 : index
    %c3 = arith.constant 3 : index
    %c0_16 = arith.constant 0 : index
    %c0_17 = arith.constant 0 : index
    %14 = vector.load %arg3[%c0_15, %c3, %c0_16, %c0_17] : memref<1x4x8x16xf32, #tpu.memory_space<vmem>>, vector<1x1x8x16xf32>
    %15 = vector.shape_cast %14 : vector<1x1x8x16xf32> to vector<8x16xf32>
    %c48 = arith.constant 48 : index
    %c0_18 = arith.constant 0 : index
    %16 = vector.load %arg4[%c48, %c0_18] : memref<64x128xf32, #tpu.memory_space<vmem>>, vector<16x128xf32>
    %cst_19 = arith.constant dense<0.000000e+00> : vector<8x128xf32>
    %17 = tpu.matmul %15, %16, %cst_19 {dimension_numbers = #tpu.dot_dimension_numbers<[1], [0], [0], [1], [0, 0, 1, 1], [], []>} : vector<8x16xf32>, vector<16x128xf32>, vector<8x128xf32> -> vector<8x128xf32>
    %18 = arith.addf %13, %17 : vector<8x128xf32>
    %c0_20 = arith.constant 0 : index
    %c0_21 = arith.constant 0 : index
    %c0_22 = arith.constant 0 : index
    %19 = vector.load %arg5[%c0_20, %c0_21, %c0_22] : memref<2x16x8xf32, #tpu.memory_space<vmem>>, vector<1x16x8xf32>
    %20 = vector.shape_cast %19 : vector<1x16x8xf32> to vector<16x8xf32>
    %c1_23 = arith.constant 1 : index
    %c0_24 = arith.constant 0 : index
    %c0_25 = arith.constant 0 : index
    %21 = vector.load %arg5[%c1_23, %c0_24, %c0_25] : memref<2x16x8xf32, #tpu.memory_space<vmem>>, vector<1x16x8xf32>
    %22 = vector.shape_cast %21 : vector<1x16x8xf32> to vector<16x8xf32>
    %23 = vector.extract_strided_slice %18 {offsets = [0, 0], sizes = [8, 32], strides = [1, 1]} : vector<8x128xf32> to vector<8x32xf32>
    %24 = vector.extract_strided_slice %18 {offsets = [0, 32], sizes = [8, 32], strides = [1, 1]} : vector<8x128xf32> to vector<8x32xf32>
    %cst_26 = arith.constant dense<0.000000e+00> : vector<16x32xf32>
    %25 = tpu.matmul %20, %23, %cst_26 {dimension_numbers = #tpu.dot_dimension_numbers<[1], [0], [0], [1], [0, 0, 1, 1], [], []>} : vector<16x8xf32>, vector<8x32xf32>, vector<16x32xf32> -> vector<16x32xf32>
    %cst_27 = arith.constant dense<0.000000e+00> : vector<16x32xf32>
    %26 = tpu.matmul %22, %24, %cst_27 {dimension_numbers = #tpu.dot_dimension_numbers<[1], [0], [0], [1], [0, 0, 1, 1], [], []>} : vector<16x8xf32>, vector<8x32xf32>, vector<16x32xf32> -> vector<16x32xf32>
    %27 = arith.addf %25, %26 : vector<16x32xf32>
    %c0_28 = arith.constant 0 : index
    %c0_29 = arith.constant 0 : index
    %c0_30 = arith.constant 0 : index
    %c0_31 = arith.constant 0 : index
    %28 = vector.load %arg6[%c0_28, %c0_29, %c0_30, %c0_31] : memref<1x2x16x32xf32, #tpu.memory_space<vmem>>, vector<1x1x16x32xf32>
    %29 = vector.shape_cast %28 : vector<1x1x16x32xf32> to vector<16x32xf32>
    %30 = vector.shape_cast %27 : vector<16x32xf32> to vector<1x1x16x32xf32>
    tpu.vector_store %arg6[%c0_28, %c0_29, %c0_30, %c0_31], %30 {strides = array<i32>} : memref<1x2x16x32xf32, #tpu.memory_space<vmem>>, vector<1x1x16x32xf32>,
    %31 = vector.extract_strided_slice %18 {offsets = [0, 64], sizes = [8, 32], strides = [1, 1]} : vector<8x128xf32> to vector<8x32xf32>
    %32 = vector.extract_strided_slice %18 {offsets = [0, 96], sizes = [8, 32], strides = [1, 1]} : vector<8x128xf32> to vector<8x32xf32>
    %cst_32 = arith.constant dense<0.000000e+00> : vector<16x32xf32>
    %33 = tpu.matmul %20, %31, %cst_32 {dimension_numbers = #tpu.dot_dimension_numbers<[1], [0], [0], [1], [0, 0, 1, 1], [], []>} : vector<16x8xf32>, vector<8x32xf32>, vector<16x32xf32> -> vector<16x32xf32>
    %cst_33 = arith.constant dense<0.000000e+00> : vector<16x32xf32>
    %34 = tpu.matmul %22, %32, %cst_33 {dimension_numbers = #tpu.dot_dimension_numbers<[1], [0], [0], [1], [0, 0, 1, 1], [], []>} : vector<16x8xf32>, vector<8x32xf32>, vector<16x32xf32> -> vector<16x32xf32>
    %35 = arith.addf %33, %34 : vector<16x32xf32>
    %c0_34 = arith.constant 0 : index
    %c1_35 = arith.constant 1 : index
    %c0_36 = arith.constant 0 : index
    %c0_37 = arith.constant 0 : index
    %36 = vector.load %arg6[%c0_34, %c1_35, %c0_36, %c0_37] : memref<1x2x16x32xf32, #tpu.memory_space<vmem>>, vector<1x1x16x32xf32>
    %37 = vector.shape_cast %36 : vector<1x1x16x32xf32> to vector<16x32xf32>
    %38 = vector.shape_cast %35 : vector<16x32xf32> to vector<1x1x16x32xf32>
    tpu.vector_store %arg6[%c0_34, %c1_35, %c0_36, %c0_37], %38 {strides = array<i32>} : memref<1x2x16x32xf32, #tpu.memory_space<vmem>>, vector<1x1x16x32xf32>,
    return
  }
  func.func @transform_0(%arg0: i32, %arg1: i32, %arg2: i32) -> (i32, i32, i32, i32) {
    %c0_i32 = arith.constant 0 : i32
    %c0_i32_0 = arith.constant 0 : i32
    return %arg0, %c0_i32, %arg1, %arg2 : i32, i32, i32, i32
  }
  func.func @transform_1(%arg0: i32, %arg1: i32, %arg2: i32) -> (i32, i32) {
    %c0_i32 = arith.constant 0 : i32
    %c0_i32_0 = arith.constant 0 : i32
    %c0_i32_1 = arith.constant 0 : i32
    return %c0_i32, %c0_i32_0 : i32, i32
  }
  func.func @transform_2(%arg0: i32, %arg1: i32, %arg2: i32) -> (i32, i32, i32) {
    %c0_i32 = arith.constant 0 : i32
    %c0_i32_0 = arith.constant 0 : i32
    %c0_i32_1 = arith.constant 0 : i32
    %c0_i32_2 = arith.constant 0 : i32
    return %c0_i32, %c0_i32_0, %c0_i32_1 : i32, i32, i32
  }
  func.func @transform_3(%arg0: i32, %arg1: i32, %arg2: i32) -> (i32, i32, i32, i32) {
    %c0_i32 = arith.constant 0 : i32
    %c0_i32_0 = arith.constant 0 : i32
    return %arg0, %c0_i32, %arg1, %arg2 : i32, i32, i32, i32
  }
}

</mosaic_0001>

<bundles_post_ra>
// kernel: tpu_custom_call.1
= control target key start
LH: loop header
LB: loop body
LE: loop exit
PB: predicated region body
PF: predicated region fallthrough
CT: control target
= control target key end

     0   :  { %s1714_s0 = inlined_call_operand.hbm [shape: f32[2,4,16,16], index: 0, kind: input, shape index: {}]   ;;  %s1715_s1 = inlined_call_operand.hbm [shape: f32[64,128], index: 1, kind: input, shape index: {}]   ;;  %s1716_s2 = inlined_call_operand.vmem [shape: f32[2,16,8], index: 2, kind: input, shape index: {}]   ;;  %s1717_s3 = inlined_call_operand.hbm [shape: f32[2,2,32,32], index: 3, kind: output, shape index: {}]  }
   0x1   :  { %1727 = sst [smem:[#allocation14_spill]] %s1715_s1 }
   0x2   :  { %8 = vsyncpa [#allocation3], 0 }
   0x3   :  { %10 = vsyncpa [#allocation3 + $0x1], 0 }
   0x4   :  { %11 = vsyncpa [#allocation6], 0 }
   0x5   :  { %12 = vsyncpa [#allocation4], 0 }
   0x6   :  { %14 = vsyncpa [#allocation4 + $0x1], 0  ;;  %s1442_s12 = smov 0   ;;  %s1444_s13 = smov 0  }
   0x7   :  { %s1446_s14 = smov 0   ;;  %s1448_s15 = smov 0  }
   0x8   :  { %s1450_s16 = smov 0   ;;  %s1452_s17 = smov 0  }
   0x9   :  { %s1454_s18 = smov 0   ;;  %s1456_s19 = smov 0  }
   0xa LB: > { %s1028_s20 = sadd.s32 4294967295, %s1402_s19   ;;  %s1029_s21 = sadd.s32 4294967294, %s1402_s19   ;;  %s1402_s19 = sphi %s1456_s19, %s20_s19   ;;  %s1398_s18 = sphi %s1454_s18, %s1754_s18   ;;  %s1394_s17 = sphi %s1452_s17, %s1753_s17   ;;  %s1390_s16 = sphi %s1450_s16, %s1752_s16   ;;  %s1386_s15 = sphi %s1448_s15, %s1751_s15   ;;  %s1382_s14 = sphi %s1446_s14, %s1750_s14   ;;  %s1378_s13 = sphi %s1444_s13, %s1749_s13   ;;  %s1374_s12 = sphi %s1442_s12, %s1748_s12  }
   0xb   : > { %p57_p0 = scmp.ne.s32.totalorder %s1382_s14, %s1378_s13  ;;  %p58_p1 = scmp.eq.s32.totalorder %s1402_s19, 0 }
   0xc   : > { %p63_p2 = scmp.ne.s32.totalorder %s1378_s13, %s1374_s12  ;;  %p1490_p3 = scmp.eq.s32.totalorder %s1028_s20, 0 }
   0xd   : > { %p133_p4 = scmp.eq.s32.totalorder %s1028_s20, 3  ;;  %p1494_p5 = por %p58_p1, %p57_p0 }
   0xe   : > { %s1728_s23 = scalar_select %p1490_p3, 1, 0 }
   0xf   : > { %p139_p6 = scmp.eq.s32.totalorder %s1029_s21, 3  ;;  %p1500_p7 = por %p1490_p3, %p63_p2 }
  0x10   : > { %p1504_p8 = por %p133_p4, %p57_p0  ;;  %p1030_p10 = scmp.ge.s32.totalorder %s1402_s19, 1 }
  0x11   : > { %s1730_s25 = scalar_select %p1500_p7, 1, 0 }
  0x12   : > { %s1731_s26 = scalar_select %p1504_p8, 1, 0 }
  0x13   : > { %p1508_p9 = por %p139_p6, %p63_p2  ;;  %p146_p11 = scmp.lt.s32.totalorder %s1402_s19, 5 }
  0x14   : > { %s1404_s29 = smov [#allocation5]   ;;  %p1186_p0 = scmp.lt.s32.totalorder %s1402_s19, 4 }
  0x15   : > { %s1732_s27 = scalar_select %p1508_p9, 1, 0 }
  0x16   : > { %p1514_p12 = pnand %p1030_p10, %p146_p11  ;;  %s158_s30 = sshll.u32 %s1404_s29, 4  ;;  %s159_s30 = int_to_ptr.vmem [resolvable:$true] %s158_s30 }
  0x17   : > { %p1529_p2 = pnand %p1186_p0, %p1494_p5  ;;  %s1736_s1 = sld [smem:[#allocation14_spill]] }
  0x18   : > { %s1733_s28 = scalar_select %p1514_p12, 1, 0 }
  0x19   : > { %p1173_p13 = pneg %p1514_p12 }
  0x1a   : > { %s1735_s5 = scalar_select %p1529_p2, 1, 0 }
  0x1b   : > { %p1523_p1 = pnand %p1173_p13, %p1490_p3 }
  0x1d   : > { %s1270_s8 = scalar_lea.hbm %s1736_s1, 1024  ;;  %p1272_p6 = pneg %p1523_p1 }
  0x1e   : > { %p1271_p4 = scmp.ne.s32.totalorder %s1736_s1, %s1270_s8  ;;  %p1277_p13 = scmp.lt.u32.totalorder %s1270_s8, %s1736_s1 }
  0x20   : > { %p1273_p10 = pnand %p1272_p6, %p1271_p4 }
  0x22   : > { %p1274_p11 = pneg %p1273_p10 }
  0x24   : > { %p1279_p5 = pnand %p1277_p13, %p1274_p11 }
  0x26   : > { %1282 = shalt.err (!%p1279_p5)
}
  0x27   : > { %s1283_s21 = scalar_lea.vmem %s159_s30, 1024  ;;  %p1291_p3 = scmp.lt.s32.totalorder %s159_s30, %s159_s30 }
  0x28   : > { %p1284_p0 = scmp.ne.s32.totalorder %s159_s30, %s1283_s21  ;;  %p1292_p7 = scmp.lt.s32.totalorder %s1283_s21, %s1283_s21 }
  0x2a   : > { %p1286_p9 = pnand %p1284_p0, %p1272_p6  ;;  %p1293_p12 = por %p1292_p7, %p1291_p3 }
  0x2c   : > { %p1287_p8 = pneg %p1286_p9 }
  0x2e   : > { %p1294_p2 = pnand %p1293_p12, %p1287_p8 }
  0x30   : > { %1297 = shalt.err (!%p1294_p2)
}
  0x31   : > { %s1724_s24 = smov 128   ;;  %s1725_s29 = smov 8  }
  0x32   : > { %1176 = dma.hbm_to_vmem [thread:$0]  (!%p1523_p1), %s1736_s1, 1024, %s159_s30, [#allocation6], %s1724_s24, %s1724_s24, %s1725_s29  }
  0x33   : > { %s35_s8 = sadd.s32 1, %s1394_s17  ;;  %s39_s9 = sadd.s32 1, %s1398_s18 }
  0x34   : > { %p37_p3 = scmp.ge.s32.totalorder %s35_s8, 2  ;;  %s175_s10 = sand.u32 1, %s1382_s14  }
  0x35   : > { %s1034_s11 = sshll.u32 %s1398_s18, 3  ;;  %s1033_s4 = sshll.u32 %s175_s10, 5 }
  0x36   : > { %s1756_s8 = smov (%p37_p3, %s35_s8), 0  ;;  %s1758_s9 = smov (!%p37_p3, %s39_s9), %s1398_s18 }
  0x37   : > { %1737 = sst [smem:[#allocation13_spill]] %s1756_s8  ;;  %s44_s20 = ssub.s32 %s1394_s17, %s1756_s8 }
  0x38   : > { %p41_p7 = scmp.ge.s32.totalorder %s1758_s9, 2  ;;  %s185_s21 = sadd.s32 %s1394_s17, %s1034_s11 }
  0x39   : > { %s1035_s30 = sshll.u32 %s185_s21, 7  ;;  %s179_s6 = scalar_lea.vmem [#allocation2], %s1033_s4 }
  0x3a   : > { %s1760_s9 = smov (%p41_p7, %s1758_s9), 0  ;;  %s188_s7 = sshll.u32 %s179_s6, 4  ;;  %s1573_s7 = int_to_ptr.vmem [resolvable:$true] %s188_s7 }
  0x3b   : > { %s43_s22 = ssub.s32 %s1398_s18, %s1760_s9  ;;  %s1569_s1 = scalar_lea.hbm %s1714_s0, %s1035_s30 }
  0x3c   : > { %s1571_s8 = sor.u32 %s44_s20, %s43_s22  ;;  %s1576_s11 = scalar_lea.sflag [#allocation3], %s175_s10 }
  0x3d   : > { %p48_p8 = scmp.eq.s32.totalorder %s1571_s8, 0  ;;  %s1298_s4 = scalar_lea.hbm %s1569_s1, 512 }
  0x3e   : > { %p1299_p9 = scmp.ne.s32.totalorder %s1569_s1, %s1298_s4  ;;  %p1738_p12 = scmp.ne.s32.totalorder %s1735_s5, 0 }
  0x3f   : > { %s1303_s21 = scalar_lea.hbm %s1714_s0, 2048  ;;  %p1304_p6 = scmp.lt.u32.totalorder %s1569_s1, %s1714_s0 }
  0x40   : > { %p1300_p1 = pneg %p1738_p12  ;;  %p1305_p10 = scmp.lt.u32.totalorder %s1303_s21, %s1298_s4 }
  0x41   : > { %p1307_p13 = scmp.lt.u32.totalorder %s1298_s4, %s1569_s1 }
  0x42   : > { %p1301_p2 = pnand %p1300_p1, %p1299_p9  ;;  %p1306_p11 = por %p1305_p10, %p1304_p6 }
  0x44   : > { %p1302_p4 = pneg %p1301_p2  ;;  %p1308_p5 = por %p1307_p13, %p1306_p11 }
  0x46   : > { %p1309_p0 = pnand %p1308_p5, %p1302_p4 }
  0x48   : > { %1312 = shalt.err (!%p1309_p0)
}
  0x49   : > { %s1313_s10 = scalar_lea.vmem %s1573_s7, 512  ;;  %s1407_s30 = smov [#allocation2]  }
  0x4a   : > { %p1314_p3 = scmp.ne.s32.totalorder %s1573_s7, %s1313_s10  ;;  %s1318_s6 = sshll.u32 %s1407_s30, 4  ;;  %s1319_s6 = int_to_ptr.vmem [resolvable:$false] %s1318_s6 }
  0x4b   : > { %s1320_s24 = scalar_lea.vmem %s1319_s6, 1024  ;;  %p1321_p2 = scmp.lt.s32.totalorder %s1573_s7, %s1319_s6 }
  0x4c   : > { %p1316_p7 = pnand %p1314_p3, %p1300_p1  ;;  %p1322_p6 = scmp.lt.s32.totalorder %s1320_s24, %s1313_s10 }
  0x4e   : > { %p1317_p9 = pneg %p1316_p7  ;;  %p1323_p10 = por %p1322_p6, %p1321_p2 }
  0x50   : > { %p1324_p11 = pnand %p1323_p10, %p1317_p9 }
  0x52   : > { %1327 = shalt.err (!%p1324_p11)
}
  0x53   : > { %s1408_s4 = smov 256   ;;  %s1739_s29 = smov 8  }
  0x54   : > { %s1740_s21 = smov 128   ;;  %s1741_s22 = sadd.s32 1, %s1382_s14 }
  0x55   : > { %1180 = dma.hbm_to_vmem [thread:$0]  (!%p1738_p12), %s1569_s1, 512, %s1573_s7, %s1576_s11, %s1408_s4, %s1740_s21, %s1739_s29  }
  0x56   : > { %s1611_s20 = scalar_select %p48_p8, %s1382_s14, %s1741_s22  }
  0x57   : > { %p1742_p1 = scmp.ne.s32.totalorder %s1733_s28, 0 }
  0x58   : > { %s1616_s10 = sand.u32 (!%p1742_p1), 1, %s1378_s13   ;;  %p1743_p12 = scmp.ne.s32.totalorder (!%p1742_p1), %s1730_s25, 0 }
  0x59   : > { %200 = sbr.rel (%p1742_p1) target bundleno = 706 (0x2c2), region = 32  ;;  %s1037_s5 = sshll.u32 (!%p1742_p1), %s1616_s10, 5 }
  0x5a   : > { %s203_s30 = scalar_lea.sflag (!%p1742_p1), [#allocation3], %s1616_s10  ;;  %s1622_s6 = scalar_lea.vmem (!%p1742_p1), [#allocation2], %s1037_s5 }
  0x60   : > { %1361 = dma.done.wait (%p1743_p12), %s203_s30, 512  }
  0x61   : > { %1363 = vsyncadd (%p1743_p12), %s203_s30, 4294966784  ;;  %p1744_p8 = scmp.ne.s32.totalorder %s1728_s23, 0 }
  0x63   : > { %1365 = dma.done.wait (%p1744_p8), [#allocation6], 1024  }
  0x64   : > { %1367 = vsyncadd (%p1744_p8), [#allocation6], 4294966272  ;;  %v1409_v0 = vmov 0.0|0.0   ;;  %vm1410_vm0 = vmmov 0   ;;  %v1411_v1 = vmov 0.0   ;;  %v239_v2 = vld [vmem:[#allocation5 + $0x10] sm:$0xff] }
  0x65   : > { %1137 = vmatprep.subr.bf16.mxu0 %v1409_v0  ;;  %1093 = vmatprep.mubr.msk.f32.mxu0 %vm1410_vm0, %v1411_v1  ;;  %v240_v3 = vld [vmem:[#allocation5 + $0x18] sm:$0xff]  ;;  %v235_v5 = vld [vmem:[#allocation5] sm:$0xff]  ;;  %v236_v6 = vld [vmem:[#allocation5 + $0x8] sm:$0xff]  ;;  %vm241_vm1 = vcmask 130048   ;;  %vm553_vm2 = vcmask 64512   ;;  %s1412_s25 = smov 64  }
  0x66   : > { %v1138_v4 = vpack.c.bf16 %v240_v3, %v239_v2  ;;  %v1040_v7 = vld [vmem:[%s1622_s6 + $0x8] sm:$0xff]  ;;  %v1141_v8 = vpack.c.bf16 %v236_v6, %v235_v5  ;;  %v390_v9 = vld [vmem:[#allocation5 + $0x20] sm:$0xff]  ;;  %v468_v13 = vld [vmem:[#allocation5 + $0x30] sm:$0xff]  ;;  %s1413_s28 = smov 96   ;;  %s1414_s8 = smov 32   ;;  %vm716_vm3 = vcmask 261120  }
  0x67   : > { %v391_v10 = vld [vmem:[#allocation5 + $0x28] sm:$0xff]  ;;  %v234_v11 = vld [vmem:[%s1622_s6] sm:$0xff]  ;;  %v469_v14 = vld [vmem:[#allocation5 + $0x38] sm:$0xff]  ;;  %s232_s22 = scalar_lea.vmem [#allocation7], %s1037_s5  ;;  %s879_s30 = scalar_lea.sflag [#allocation4], %s1616_s10 }
  0x68   : > { %1139 = vmatpush3.bf16.msra.mxu0 %v1138_v4  ;;  %v1144_v12 = vpack.c.bf16 %v391_v10, %v390_v9  ;;  %v1043_v15 = vld [vmem:[%s1622_s6 + $0x10] sm:$0xff]  ;;  %v1147_v16 = vpack.c.bf16 %v469_v14, %v468_v13  ;;  %v1045_v17 = vld [vmem:[%s1622_s6 + $0x18] sm:$0xff]  ;;  %v544_v23 = vld [vmem:[%s1716_s2] sm:$0xff] }
  0x69   : > { %1140 = vmatprep.subr.bf16.mxu0 %v1409_v0  ;;  %v1047_v18 = vld [vmem:[%s1716_s2 + $0x10] sm:$0xff]  ;;  %v1048_v22 = vld [vmem:[%s1716_s2 + $0x18] sm:$0xff]  ;;  %v545_v25 = vld [vmem:[%s1716_s2 + $0x8] sm:$0xff] }
  0x6a   : > { %1119 = vmatprep.mubr.msk.f32.mxu1 %vm553_vm2, %v1047_v18 }
  0x6b   : > { %1094 = vmatmul.mubr.msk.f32.vlgmr.msra.gmra.mrb[0].mxu0 %vm241_vm1, %v1040_v7 }
  0x6c   : > { %1142 = vmatpush3.bf16.msra.mxu0 %v1141_v8  ;;  %1100 = vmatprep.mubr.msk.f32.mxu0 %vm1410_vm0, %v1411_v1 }
  0x6d   : > { %1143 = vmatprep.subr.bf16.mxu0 %v1409_v0 }
  0x73   : > { %1101 = vmatmul.mubr.msk.f32.vlgmr.msra.gmra.mrb[0].mxu0 %vm241_vm1, %v234_v11 }
  0x74   : > { %1145 = vmatpush3.bf16.msra.mxu0 %v1144_v12  ;;  %1107 = vmatprep.mubr.msk.f32.mxu0 %vm1410_vm0, %v1411_v1 }
  0x75   : > { %1146 = vmatprep.subr.bf16.mxu0 %v1409_v0 }
  0x7b   : > { %1108 = vmatmul.mubr.msk.f32.vlgmr.msra.gmra.mrb[0].mxu0 %vm241_vm1, %v1043_v15 }
  0x7c   : > { %1148 = vmatpush3.bf16.msra.mxu0 %v1147_v16  ;;  %1114 = vmatprep.mubr.msk.f32.mxu0 %vm1410_vm0, %v1411_v1 }
  0x83   : > { %1115 = vmatmul.mubr.msk.f32.vlgmr.msra.gmra.mrb[0].mxu0 %vm241_vm1, %v1045_v17 }
 0x156   : > { %v539_v19 = vpop.f32.mrb[0].mxu0 }
 0x157   : > { %797 = vrot.lane.b32.xlu1 %v539_v19, %s1412_s25  ;;  %550 = vrot.lane.b32.xlu0 %v539_v19, %s1413_s28  ;;  %v1116_v20 = vpop.f32.mrb[1].mxu0 }
 0x15b   : > { %719 = vrot.lane.b32.xlu0 %v539_v19, %s1414_s8 }
 0x1c9   : > { %v551_v21 = vpop.permute.xlu0 %550  ;;  %v798_v26 = vpop.permute.xlu1 %797 }
 0x1ca   : > { %1117 = vmatprep.subr.mxu1 %v551_v21 }
 0x1cb   : > { %1118 = vmatpush3.msra.mxu1 %v551_v21 }
 0x1cc   : > { %1120 = vmatmul.mubr.msk.f32.vlgmr.msra.gmra.mrb[0].mxu1 %vm553_vm2, %v1048_v22  ;;  %1122 = vmatprep.subr.mxu1 %v539_v19 }
 0x1cd   : > { %1123 = vmatpush3.msra.mxu1 %v539_v19  ;;  %v720_v24 = vpop.permute.xlu0 %719  ;;  %1124 = vmatprep.mubr.msk.f32.mxu1 %vm553_vm2, %v544_v23 }
 0x1ce   : > { %1127 = vmatprep.subr.mxu1 %v720_v24 }
 0x1d4   : > { %1125 = vmatmul.mubr.msk.f32.vlgmr.msra.gmra.mrb[0].mxu1 %vm553_vm2, %v545_v25 }
 0x1d5   : > { %1128 = vmatpush3.msra.mxu1 %v720_v24  ;;  %1129 = vmatprep.mubr.msk.f32.mxu1 %vm553_vm2, %v1047_v18 }
 0x1d6   : > { %1132 = vmatprep.subr.mxu1 %v798_v26 }
 0x1d8   : > { %1130 = vmatmul.mubr.msk.f32.vlgmr.msra.gmra.mrb[2].mxu1 %vm553_vm2, %v1048_v22 }
 0x1d9   : > { %1133 = vmatpush3.msra.mxu1 %v798_v26  ;;  %1134 = vmatprep.mubr.msk.f32.mxu1 %vm553_vm2, %v544_v23 }
 0x1e0   : > { %1135 = vmatmul.mubr.msk.f32.vlgmr.msra.gmra.mrb[2].mxu1 %vm553_vm2, %v545_v25 }
 0x2a7   : > { %v1126_v27 = vpop.f32.mrb[0].mxu1 }
 0x2a8   : > { %718 = vst.msk [vmem:[%s232_s22 + $0x8] sm:$0xff] %vm716_vm3, %v1126_v27  ;;  %v707_v28 = vpop.f32.mrb[1].mxu1 }
 0x2a9   : > { %717 = vst.msk [vmem:[%s232_s22] sm:$0xff] %vm716_vm3, %v707_v28 }
 0x2b3   : > { %v1136_v29 = vpop.f32.mrb[2].mxu1 }
 0x2b4   : > { %1058 = vst.msk [vmem:[%s232_s22 + $0x18] sm:$0xff] %vm716_vm3, %v1136_v29  ;;  %v866_v30 = vpop.f32.mrb[3].mxu1 }
 0x2b5   : > { %1057 = vst.msk [vmem:[%s232_s22 + $0x10] sm:$0xff] %vm716_vm3, %v866_v30 }
 0x2b6   : > { %s1060_s6 = sshll.u32 %s1386_s15, 1  ;;  %s1061_s1 = sshll.u32 %s1390_s16, 3 }
 0x2b7   : > { %s892_s23 = sadd.s32 %s1061_s1, %s1060_s6  ;;  %s911_s5 = sshll.u32 %s232_s22, 4  ;;  %s912_s5 = int_to_ptr.vmem [resolvable:$true] %s911_s5 }
 0x2b8   : > { %s1062_s25 = sshll.u32 %s892_s23, 7  ;;  %s1415_s10 = smov 256  }
 0x2b9   : > { %s894_s7 = scalar_lea.hbm %s1717_s3, %s1062_s25  ;;  %p1745_p4 = scmp.ne.s32.totalorder %s1731_s26, 0 }
 0x2ba   : > { %s1416_s11 = smov 512   ;;  %s1417_s24 = smov 2  }
 0x2bb   : > { %1165 = sst [smem:[#allocation9]] (%p1745_p4), %s1415_s10  ;;  %s1418_s15 = smov 128  }
 0x2bc   : > { %1166 = sst [smem:[#allocation9 + $0x1]] (%p1745_p4), %s1416_s11  ;;  %s1419_s16 = smov 8  }
 0x2bd   : > { %1167 = sst [smem:[#allocation9 + $0x2]] (%p1745_p4), %s1417_s24  ;;  %s1420_s4 = smov [#allocation8]  }
 0x2be   : > { %1168 = sst [smem:[#allocation9 + $0x3]] (%p1745_p4), %s1418_s15  ;;  %s1421_s29 = smov 0  }
 0x2bf   : > { %1169 = sst [smem:[#allocation9 + $0x4]] (%p1745_p4), %s1418_s15 }
 0x2c0   : > { %1170 = sst [smem:[#allocation9 + $0x5]] (%p1745_p4), %s1419_s16 }
 0x2c1   : > { %1171 = dma.general (%p1745_p4), %s912_s5, 512, %s894_s7, %s879_s30, %s1420_s4, [#allocation9], %s1421_s29, 0  }
 0x2c2 PF: > { %p1188_p13 = scmp.ge.s32.totalorder %s1402_s19, 2  ;;  %s939_s21 = sand.u32 1, %s1374_s12  }
 0x2c3   : > { %p1746_p5 = scmp.ne.s32.totalorder %s1732_s27, 0  ;;  %s940_s22 = scalar_lea.sflag [#allocation4], %s939_s21 }
 0x2c5   : > { %p1182_p0 = pnand %p1188_p13, %p1746_p5 }
 0x2c7   : > { %1369 = dma.done.wait (!%p1182_p0), %s940_s22, 512  }
 0x2c8   : > { %1371 = vsyncadd (!%p1182_p0), %s940_s22, 4294966784  ;;  %s20_s19 = sadd.s32 1, %s1402_s19   ;;  %s1747_s26 = sld [smem:[#allocation13_spill]] }
 0x2c9   : > { %p17_p3 = scmp.ge.s32.totalorder %s20_s19, 6   ;;  %s1748_s12 = smov %s1378_s13 }
 0x2ca   : > { %s1749_s13 = smov %s1382_s14  ;;  %s1750_s14 = smov %s1611_s20 }
 0x2cb   : > { %s1751_s15 = smov %s1394_s17  ;;  %s1752_s16 = smov %s1398_s18 }
 0x2cc   : > { %s1754_s18 = smov %s1760_s9  ;;  %19 = sbr.rel (!%p17_p3) target bundleno = 10 (0xa), region = 91 }
 0x2ce   : > { %s1753_s17 = smov %s1747_s26 }
 0x2d3   :  { %945 = vsyncpa [#allocation3], 1 }
 0x2d4   :  { %947 = vsyncpa [#allocation3 + $0x1], 1 }
 0x2d5   :  { %948 = vsyncpa [#allocation6], 1 }
 0x2d6   :  { %949 = vsyncpa [#allocation4], 1 }
 0x2d7   :  { %951 = vsyncpa [#allocation4 + $0x1], 1 }

</bundles_post_ra>
